<compile_context>
chip_gen: v7x
topology: tpu7x:2x2x1
jax: 0.10.0
libtpu: 0.0.40
codegen_flags: <defaults>
</compile_context>

<pallas_src>
import functools

import jax
import jax.numpy as jnp
from jax.experimental import pallas as pl
from jax.experimental.pallas import tpu as pltpu


# ---------------------------------------------------------------------------
# Kernel: three plain 2-D matmuls per batch tile.
# ---------------------------------------------------------------------------
def gcn_critic_kernel(s_ref, a_ref,
                      w1s_ref, w1a_ref, b1_ref,
                      w2_ref, b2_ref,
                      wq_ref, bq_ref,
                      q_ref):
    """One batch tile of the GCNCritic forward.

    s_ref  : [tb, N*S]   flat joint states  (bf16 or f32)
    a_ref  : [tb, N*A]   flat joint actions
    w1s/w1a: layer-1 Kronecker-folded weights, split into state / action rows
    b1     : [1, N*H]    folded layer-1 bias (f32)
    w2     : [N*H, N*H]  layer-2 Kronecker-folded weight
    b2     : [1, N*H]    folded layer-2 bias (f32)
    wq     : [N*H, 2]    mean-pool + twin Q heads, fused
    bq     : [1, 2]
    q_ref  : [tb, 2]     (q1, q2) per batch row, f32
    """
    # ---- GCN layer 1: [tb, N*S]@[N*S, N*H] + [tb, N*A]@[N*A, N*H] (MXU) ----
    h = jnp.dot(s_ref[...], w1s_ref[...], preferred_element_type=jnp.float32)
    h = h + jnp.dot(a_ref[...], w1a_ref[...], preferred_element_type=jnp.float32)
    h = jnp.maximum(h + b1_ref[...], 0.0)          # bias + relu in f32 (VPU)
    h = h.astype(w2_ref.dtype)                     # back to matmul dtype

    # ---- GCN layer 2: [tb, N*H] @ [N*H, N*H] -------------------------------
    h2 = jnp.dot(h, w2_ref[...], preferred_element_type=jnp.float32)
    h2 = jnp.maximum(h2 + b2_ref[...], 0.0)
    h2 = h2.astype(wq_ref.dtype)

    # ---- fused agent-mean + twin Q heads: [tb, N*H] @ [N*H, 2] -------------
    q_ref[...] = (jnp.dot(h2, wq_ref[...], preferred_element_type=jnp.float32)
                  + bq_ref[...])


# ---------------------------------------------------------------------------
# Parameter construction & one-time algebraic / Kronecker fold.
# ---------------------------------------------------------------------------
def make_params(key, state_dim, action_dim, hidden_dim):
    """Deterministic synthetic params (weights stored as [in, out])."""
    feat = state_dim + action_dim
    shapes = [
        ("w1s", (feat, hidden_dim)), ("b1s", (1, hidden_dim)),
        ("w1n", (feat, hidden_dim)), ("b1n", (1, hidden_dim)),
        ("w2s", (hidden_dim, hidden_dim)), ("b2s", (1, hidden_dim)),
        ("w2n", (hidden_dim, hidden_dim)), ("b2n", (1, hidden_dim)),
        ("wq1", (hidden_dim, 1)), ("bq1", (1, 1)),
        ("wq2", (hidden_dim, 1)), ("bq2", (1, 1)),
    ]
    keys = jax.random.split(key, len(shapes))
    return {name: 0.1 * jax.random.normal(k, shape, dtype=jnp.float32)
            for (name, shape), k in zip(shapes, keys)}


def fold_params(params, n_agents, state_dim, action_dim,
                compute_dtype=jnp.bfloat16):
    """One-time Kronecker fold (OUTSIDE the per-step path). Folds in f32,
    casts matmul operands to `compute_dtype`; biases stay f32."""
    n = n_agents
    c = 1.0 / max(n - 1, 1)
    p = {k: v.astype(jnp.float32) for k, v in params.items()}
    hidden = p["w1s"].shape[1]
    feat = state_dim + action_dim

    eye = jnp.eye(n, dtype=jnp.float32)
    ones = jnp.ones((n, n), dtype=jnp.float32)

    def big(ws, wn):
        # block (m, agent_out) = c*Wn  (+ Ws - c*Wn on the diagonal)
        return jnp.kron(eye, ws - c * wn) + jnp.kron(ones, c * wn)

    w1_big = big(p["w1s"], p["w1n"])                      # [N*F, N*H]
    w2_big = big(p["w2s"], p["w2n"])                      # [N*H, N*H]
    b1_big = jnp.tile(p["b1s"] + p["b1n"], (1, n))        # [1, N*H]
    b2_big = jnp.tile(p["b2s"] + p["b2n"], (1, n))        # [1, N*H]

    wq = jnp.concatenate([p["wq1"], p["wq2"]], axis=1)    # [H, 2]
    bq = jnp.concatenate([p["bq1"], p["bq2"]], axis=1)    # [1, 2]
    wq_big = jnp.tile(wq, (n, 1)) / n                     # [N*H, 2]  (mean pool folded)

    # Split layer-1 rows into state-rows / action-rows so the kernel can take
    # `states` and `actions` directly (no wrapper-side concat/copy of x).
    w1_rows = w1_big.reshape(n, feat, n * hidden)
    w1s_big = w1_rows[:, :state_dim, :].reshape(n * state_dim, n * hidden)
    w1a_big = w1_rows[:, state_dim:, :].reshape(n * action_dim, n * hidden)

    return {
        "w1s_big": w1s_big.astype(compute_dtype),
        "w1a_big": w1a_big.astype(compute_dtype),
        "b1_big": b1_big,                                  # f32
        "w2_big": w2_big.astype(compute_dtype),
        "b2_big": b2_big,                                  # f32
        "wq_big": wq_big.astype(compute_dtype),
        "bq": bq,                                          # f32
    }


# ---------------------------------------------------------------------------
# Host wrapper.
# ---------------------------------------------------------------------------
def _round_up(v, m):
    return ((v + m - 1) // m) * m


@functools.partial(jax.jit, static_argnames=("tile_b",))
def gcn_critic_forward(states, actions, folded, tile_b=None):
    """states: [B, N*S], actions: [B, N*A] -> (q1 [B,1], q2 [B,1])."""
    B = states.shape[0]
    ns = folded["w1s_big"].shape[0]     # N * state_dim
    na = folded["w1a_big"].shape[0]     # N * action_dim
    nh = folded["w2_big"].shape[0]      # N * hidden
    cdtype = folded["w1s_big"].dtype

    # Batch tile: big tiles amortize the ~0.35 us/step pipeline overhead; keep
    # >= 2 grid steps when B allows so v7x megacore can shard the batch axis.
    if tile_b is None:
        b_al = _round_up(B, 16)                     # 16 keeps bf16 sublanes happy
        if b_al >= 1024:
            tile_b = 512
        elif b_al >= 32:
            tile_b = _round_up(b_al // 2, 16)       # at least 2 grid steps
        else:
            tile_b = b_al                           # tiny batch: single tile
    tb = tile_b
    b_pad = pl.cdiv(B, tb) * tb

    s = states.astype(cdtype)
    a = actions.astype(cdtype)
    if b_pad != B:
        # Padded rows never mix with real rows (everything is per-batch-row)
        # and are sliced off below.
        s = jnp.pad(s, ((0, b_pad - B), (0, 0)))
        a = jnp.pad(a, ((0, b_pad - B), (0, 0)))

    const = lambda i: (0, 0)   # weights: constant index_map -> DMA'd once, VMEM-resident
    q = pl.pallas_call(
        gcn_critic_kernel,
        out_shape=jax.ShapeDtypeStruct((b_pad, 2), jnp.float32),
        grid=(b_pad // tb,),
        in_specs=[
            pl.BlockSpec((tb, ns), lambda i: (i, 0)),    # states tile
            pl.BlockSpec((tb, na), lambda i: (i, 0)),    # actions tile
            pl.BlockSpec((ns, nh), const),               # w1s_big
            pl.BlockSpec((na, nh), const),               # w1a_big
            pl.BlockSpec((1, nh), const),                # b1_big
            pl.BlockSpec((nh, nh), const),               # w2_big
            pl.BlockSpec((1, nh), const),                # b2_big
            pl.BlockSpec((nh, 2), const),                # wq_big (mean + twin heads)
            pl.BlockSpec((1, 2), const),                 # bq
        ],
        out_specs=pl.BlockSpec((tb, 2), lambda i: (i, 0)),
        compiler_params=pltpu.CompilerParams(
            dimension_semantics=("parallel",)),
    )(s, a,
      folded["w1s_big"], folded["w1a_big"], folded["b1_big"],
      folded["w2_big"], folded["b2_big"],
      folded["wq_big"], folded["bq"])

    q = q[:B]
    return q[:, 0:1], q[:, 1:2]


# ---------------------------------------------------------------------------
# Pure-JAX reference mirroring the PyTorch module semantics.
# ---------------------------------------------------------------------------
def gcn_critic_reference(states, actions, params, n_agents):
    B = states.shape[0]
    state_dim = states.shape[1] // n_agents
    action_dim = actions.shape[1] // n_agents
    x = jnp.concatenate([states.reshape(B, n_agents, state_dim),
                         actions.reshape(B, n_agents, action_dim)], axis=2)
    adj = jnp.ones((n_agents, n_agents), jnp.float32) - jnp.eye(n_agents, dtype=jnp.float32)
    degree = jnp.maximum(adj.sum(axis=1), 1.0)
    norm_adj = adj / degree[:, None]

    def layer(x, ws, bs, wn, bn):
        self_loop = x @ ws + bs
        agg = jnp.einsum("nm,bmf->bnf", norm_adj, x)
        return jax.nn.relu(self_loop + agg @ wn + bn)

    p = params
    h = layer(x, p["w1s"], p["b1s"][0], p["w1n"], p["b1n"][0])
    h = layer(h, p["w2s"], p["b2s"][0], p["w2n"], p["b2n"][0])
    pooled = h.mean(axis=1)
    q1 = pooled @ p["wq1"] + p["bq1"][0]
    q2 = pooled @ p["wq2"] + p["bq2"][0]
    return q1, q2


if __name__ == "__main__":
    batch_size, n_agents, state_dim, action_dim, hidden_dim = 2, 4, 8, 4, 32

    key = jax.random.PRNGKey(0)
    k_params, k_s, k_a = jax.random.split(key, 3)
    params = make_params(k_params, state_dim, action_dim, hidden_dim)

    states = jax.random.normal(k_s, (batch_size, n_agents * state_dim), dtype=jnp.float32)
    actions = jax.random.normal(k_a, (batch_size, n_agents * action_dim), dtype=jnp.float32)

    r1, r2 = gcn_critic_reference(states, actions, params, n_agents)

    # f32 path: the Kronecker / bias / mean-pool folds are algebraically exact.
    folded_f32 = fold_params(params, n_agents, state_dim, action_dim,
                             compute_dtype=jnp.float32)
    q1_f32, q2_f32 = gcn_critic_forward(states, actions, folded_f32)
    jax.block_until_ready((q1_f32, q2_f32))
    assert q1_f32.shape == (batch_size, 1) and q2_f32.shape == (batch_size, 1)
    assert jnp.allclose(q1_f32, r1, atol=1e-4, rtol=1e-4), float(jnp.max(jnp.abs(q1_f32 - r1)))
    assert jnp.allclose(q2_f32, r2, atol=1e-4, rtol=1e-4), float(jnp.max(jnp.abs(q2_f32 - r2)))

    # bf16 matmul-operand path (production default on v6e/v7x): looser check.
    folded_bf16 = fold_params(params, n_agents, state_dim, action_dim,
                              compute_dtype=jnp.bfloat16)
    q1, q2 = gcn_critic_forward(states, actions, folded_bf16)
    jax.block_until_ready((q1, q2))
    assert jnp.allclose(q1, r1, atol=5e-2, rtol=5e-2), float(jnp.max(jnp.abs(q1 - r1)))
    assert jnp.allclose(q2, r2, atol=5e-2, rtol=5e-2), float(jnp.max(jnp.abs(q2 - r2)))

    print("KERNEL_OK")
</pallas_src>

<mosaic_0001>
module attributes {stable_mosaic.version = 11 : i64} {
  func.func @gcn_critic_kernel(%arg0: i32, %arg1: memref<16x32xf32, #tpu.memory_space<vmem>>, %arg2: memref<16x16xf32, #tpu.memory_space<vmem>>, %arg3: memref<32x128xf32, #tpu.memory_space<vmem>>, %arg4: memref<16x128xf32, #tpu.memory_space<vmem>>, %arg5: memref<1x128xf32, #tpu.memory_space<vmem>>, %arg6: memref<128x128xf32, #tpu.memory_space<vmem>>, %arg7: memref<1x128xf32, #tpu.memory_space<vmem>>, %arg8: memref<128x2xf32, #tpu.memory_space<vmem>>, %arg9: memref<1x2xf32, #tpu.memory_space<vmem>>, %arg10: memref<16x2xf32, #tpu.memory_space<vmem>>) attributes {dimension_semantics = [#tpu.dimension_semantics<parallel>], iteration_bounds = array<i64: 1>, scalar_prefetch = 0 : i64, scratch_operands = 0 : i64, tpu.core_type = #tpu.core_type<tc>, window_params = [{transform_indices = @transform_0, window_bounds = array<i64: 16, 32>}, {transform_indices = @transform_1, window_bounds = array<i64: 16, 16>}, {pipeline_mode = #tpu.pipeline_mode<synchronous>, transform_indices = @transform_2, window_bounds = array<i64: 32, 128>}, {pipeline_mode = #tpu.pipeline_mode<synchronous>, transform_indices = @transform_3, window_bounds = array<i64: 16, 128>}, {pipeline_mode = #tpu.pipeline_mode<synchronous>, transform_indices = @transform_4, window_bounds = array<i64: 1, 128>}, {pipeline_mode = #tpu.pipeline_mode<synchronous>, transform_indices = @transform_5, window_bounds = array<i64: 128, 128>}, {pipeline_mode = #tpu.pipeline_mode<synchronous>, transform_indices = @transform_6, window_bounds = array<i64: 1, 128>}, {pipeline_mode = #tpu.pipeline_mode<synchronous>, transform_indices = @transform_7, window_bounds = array<i64: 128, 2>}, {pipeline_mode = #tpu.pipeline_mode<synchronous>, transform_indices = @transform_8, window_bounds = array<i64: 1, 2>}, {transform_indices = @transform_9, window_bounds = array<i64: 16, 2>}]} {
    %c0 = arith.constant 0 : index
    %c0_0 = arith.constant 0 : index
    %0 = vector.load %arg1[%c0, %c0_0] : memref<16x32xf32, #tpu.memory_space<vmem>>, vector<16x32xf32>
    %c0_1 = arith.constant 0 : index
    %c0_2 = arith.constant 0 : index
    %1 = vector.load %arg3[%c0_1, %c0_2] : memref<32x128xf32, #tpu.memory_space<vmem>>, vector<32x128xf32>
    %cst = arith.constant dense<0.000000e+00> : vector<16x128xf32>
    %2 = tpu.matmul %0, %1, %cst {dimension_numbers = #tpu.dot_dimension_numbers<[1], [0], [0], [1], [0, 0, 1, 1], [], []>} : vector<16x32xf32>, vector<32x128xf32>, vector<16x128xf32> -> vector<16x128xf32>
    %c0_3 = arith.constant 0 : index
    %c0_4 = arith.constant 0 : index
    %3 = vector.load %arg2[%c0_3, %c0_4] : memref<16x16xf32, #tpu.memory_space<vmem>>, vector<16x16xf32>
    %c0_5 = arith.constant 0 : index
    %c0_6 = arith.constant 0 : index
    %4 = vector.load %arg4[%c0_5, %c0_6] : memref<16x128xf32, #tpu.memory_space<vmem>>, vector<16x128xf32>
    %cst_7 = arith.constant dense<0.000000e+00> : vector<16x128xf32>
    %5 = tpu.matmul %3, %4, %cst_7 {dimension_numbers = #tpu.dot_dimension_numbers<[1], [0], [0], [1], [0, 0, 1, 1], [], []>} : vector<16x16xf32>, vector<16x128xf32>, vector<16x128xf32> -> vector<16x128xf32>
    %6 = arith.addf %2, %5 : vector<16x128xf32>
    %c0_8 = arith.constant 0 : index
    %c0_9 = arith.constant 0 : index
    %7 = vector.load %arg5[%c0_8, %c0_9] : memref<1x128xf32, #tpu.memory_space<vmem>>, vector<1x128xf32>
    %8 = vector.broadcast %7 : vector<1x128xf32> to vector<16x128xf32>
    %9 = arith.addf %6, %8 : vector<16x128xf32>
    %cst_10 = arith.constant 0.000000e+00 : f32
    %10 = vector.broadcast %cst_10 : f32 to vector<16x128xf32>
    %11 = arith.maximumf %9, %10 : vector<16x128xf32>
    %c0_11 = arith.constant 0 : index
    %c0_12 = arith.constant 0 : index
    %12 = vector.load %arg6[%c0_11, %c0_12] : memref<128x128xf32, #tpu.memory_space<vmem>>, vector<128x128xf32>
    %cst_13 = arith.constant dense<0.000000e+00> : vector<16x128xf32>
    %13 = tpu.matmul %11, %12, %cst_13 {dimension_numbers = #tpu.dot_dimension_numbers<[1], [0], [0], [1], [0, 0, 1, 1], [], []>} : vector<16x128xf32>, vector<128x128xf32>, vector<16x128xf32> -> vector<16x128xf32>
    %c0_14 = arith.constant 0 : index
    %c0_15 = arith.constant 0 : index
    %14 = vector.load %arg7[%c0_14, %c0_15] : memref<1x128xf32, #tpu.memory_space<vmem>>, vector<1x128xf32>
    %15 = vector.broadcast %14 : vector<1x128xf32> to vector<16x128xf32>
    %16 = arith.addf %13, %15 : vector<16x128xf32>
    %cst_16 = arith.constant 0.000000e+00 : f32
    %17 = vector.broadcast %cst_16 : f32 to vector<16x128xf32>
    %18 = arith.maximumf %16, %17 : vector<16x128xf32>
    %c0_17 = arith.constant 0 : index
    %c0_18 = arith.constant 0 : index
    %19 = vector.load %arg8[%c0_17, %c0_18] : memref<128x2xf32, #tpu.memory_space<vmem>>, vector<128x2xf32>
    %cst_19 = arith.constant dense<0.000000e+00> : vector<16x2xf32>
    %20 = tpu.matmul %18, %19, %cst_19 {dimension_numbers = #tpu.dot_dimension_numbers<[1], [0], [0], [1], [0, 0, 1, 1], [], []>} : vector<16x128xf32>, vector<128x2xf32>, vector<16x2xf32> -> vector<16x2xf32>
    %c0_20 = arith.constant 0 : index
    %c0_21 = arith.constant 0 : index
    %21 = vector.load %arg9[%c0_20, %c0_21] : memref<1x2xf32, #tpu.memory_space<vmem>>, vector<1x2xf32>
    %22 = vector.broadcast %21 : vector<1x2xf32> to vector<16x2xf32>
    %23 = arith.addf %20, %22 : vector<16x2xf32>
    %c0_22 = arith.constant 0 : index
    %c0_23 = arith.constant 0 : index
    %24 = vector.load %arg10[%c0_22, %c0_23] : memref<16x2xf32, #tpu.memory_space<vmem>>, vector<16x2xf32>
    tpu.vector_store %arg10[%c0_22, %c0_23], %23 {strides = array<i32>} : memref<16x2xf32, #tpu.memory_space<vmem>>, vector<16x2xf32>,
    return
  }
  func.func @transform_0(%arg0: i32) -> (i32, i32) {
    %c0_i32 = arith.constant 0 : i32
    %c0_i32_0 = arith.constant 0 : i32
    return %arg0, %c0_i32 : i32, i32
  }
  func.func @transform_1(%arg0: i32) -> (i32, i32) {
    %c0_i32 = arith.constant 0 : i32
    %c0_i32_0 = arith.constant 0 : i32
    return %arg0, %c0_i32 : i32, i32
  }
  func.func @transform_2(%arg0: i32) -> (i32, i32) {
    %c0_i32 = arith.constant 0 : i32
    %c0_i32_0 = arith.constant 0 : i32
    %c0_i32_1 = arith.constant 0 : i32
    return %c0_i32, %c0_i32_0 : i32, i32
  }
  func.func @transform_3(%arg0: i32) -> (i32, i32) {
    %c0_i32 = arith.constant 0 : i32
    %c0_i32_0 = arith.constant 0 : i32
    %c0_i32_1 = arith.constant 0 : i32
    return %c0_i32, %c0_i32_0 : i32, i32
  }
  func.func @transform_4(%arg0: i32) -> (i32, i32) {
    %c0_i32 = arith.constant 0 : i32
    %c0_i32_0 = arith.constant 0 : i32
    %c0_i32_1 = arith.constant 0 : i32
    return %c0_i32, %c0_i32_0 : i32, i32
  }
  func.func @transform_5(%arg0: i32) -> (i32, i32) {
    %c0_i32 = arith.constant 0 : i32
    %c0_i32_0 = arith.constant 0 : i32
    %c0_i32_1 = arith.constant 0 : i32
    return %c0_i32, %c0_i32_0 : i32, i32
  }
  func.func @transform_6(%arg0: i32) -> (i32, i32) {
    %c0_i32 = arith.constant 0 : i32
    %c0_i32_0 = arith.constant 0 : i32
    %c0_i32_1 = arith.constant 0 : i32
    return %c0_i32, %c0_i32_0 : i32, i32
  }
  func.func @transform_7(%arg0: i32) -> (i32, i32) {
    %c0_i32 = arith.constant 0 : i32
    %c0_i32_0 = arith.constant 0 : i32
    %c0_i32_1 = arith.constant 0 : i32
    return %c0_i32, %c0_i32_0 : i32, i32
  }
  func.func @transform_8(%arg0: i32) -> (i32, i32) {
    %c0_i32 = arith.constant 0 : i32
    %c0_i32_0 = arith.constant 0 : i32
    %c0_i32_1 = arith.constant 0 : i32
    return %c0_i32, %c0_i32_0 : i32, i32
  }
  func.func @transform_9(%arg0: i32) -> (i32, i32) {
    %c0_i32 = arith.constant 0 : i32
    %c0_i32_0 = arith.constant 0 : i32
    return %arg0, %c0_i32 : i32, i32
  }
}

</mosaic_0001>

<bundles_post_ra>
// kernel: gcn_critic_forward.1
= control target key start
LH: loop header
LB: loop body
LE: loop exit
PB: predicated region body
PF: predicated region fallthrough
CT: control target
= control target key end

     0   :  { %vm42_vm0 = vcmask 130048   ;;  %vm124_vm1 = vcmask 261120   ;;  %vm415_vm2 = vcmask 15360   ;;  %s836_s2 = inlined_call_operand.vmem [shape: f32[32,128], index: 2, kind: input, shape index: {}]   ;;  %s837_s3 = inlined_call_operand.vmem [shape: f32[16,128], index: 3, kind: input, shape index: {}]   ;;  %s838_s1 = inlined_call_operand.vmem [shape: f32[16,16], index: 1, kind: input, shape index: {}]   ;;  %s839_s0 = inlined_call_operand.vmem [shape: f32[16,32], index: 0, kind: input, shape index: {}]   ;;  %s840_s5 = inlined_call_operand.vmem [shape: f32[128,128], index: 5, kind: input, shape index: {}]   ;;  %s841_s7 = inlined_call_operand.vmem [shape: f32[128,2], index: 7, kind: input, shape index: {}]   ;;  %s842_s4 = inlined_call_operand.vmem [shape: f32[1,128], index: 4, kind: input, shape index: {}]   ;;  %s843_s6 = inlined_call_operand.vmem [shape: f32[1,128], index: 6, kind: input, shape index: {}]   ;;  %s844_s8 = inlined_call_operand.vmem [shape: f32[1,2], index: 8, kind: input, shape index: {}]   ;;  %s845_s9 = inlined_call_operand.vmem [shape: f32[16,2], index: 9, kind: output, shape index: {}]  }
   0x1   :  { %v34_v0 = vld [vmem:[%s836_s2] sm:$0xff]  ;;  %v35_v1 = vld [vmem:[%s836_s2 + $0x8] sm:$0xff]  ;;  %v36_v5 = vld [vmem:[%s836_s2 + $0x10] sm:$0xff] }
   0x2   :  { %v40_v2 = vld [vmem:[%s837_s3] sm:$0xff]  ;;  %v567_v3 = vpack.c.bf16 %v35_v1, %v34_v0  ;;  %v41_v4 = vld [vmem:[%s837_s3 + $0x8] sm:$0xff]  ;;  %v37_v6 = vld [vmem:[%s836_s2 + $0x18] sm:$0xff] }
   0x3   :  { %v563_v7 = vpack.c.bf16 %v41_v4, %v40_v2  ;;  %v571_v8 = vpack.c.bf16 %v37_v6, %v36_v5  ;;  %v38_v9 = vld [vmem:[%s838_s1] sm:$0xff]  ;;  %v218_v12 = vld [vmem:[%s840_s5 + $0x8] sm:$0xff]  ;;  %v219_v14 = vld [vmem:[%s840_s5 + $0x10] sm:$0xff] }
   0x4   :  { %568 = vmatprep.subr.bf16.mxu0 %v567_v3  ;;  %479 = vmatprep.mubr.msk.f32.mxu1 %vm42_vm0, %v38_v9  ;;  %v32_v10 = vld [vmem:[%s839_s0] sm:$0xff]  ;;  %v220_v15 = vld [vmem:[%s840_s5 + $0x18] sm:$0xff]  ;;  %v39_v16 = vld [vmem:[%s838_s1 + $0x8] sm:$0xff] }
   0x5   :  { %v217_v11 = vld [vmem:[%s840_s5] sm:$0xff]  ;;  %570 = vmatpush3.bf16.msra.mxu0 %v567_v3  ;;  %564 = vmatprep.subr.bf16.mxu1 %v563_v7  ;;  %v579_v17 = vpack.c.bf16 %v220_v15, %v219_v14  ;;  %v222_v19 = vld [vmem:[%s840_s5 + $0x28] sm:$0xff]  ;;  %v223_v22 = vld [vmem:[%s840_s5 + $0x30] sm:$0xff] }
   0x6   :  { %v575_v13 = vpack.c.bf16 %v218_v12, %v217_v11  ;;  %566 = vmatpush3.bf16.msra.mxu1 %v563_v7  ;;  %572 = vmatprep.subr.bf16.mxu0 %v571_v8  ;;  %v221_v18 = vld [vmem:[%s840_s5 + $0x20] sm:$0xff]  ;;  %v33_v20 = vld [vmem:[%s839_s0 + $0x8] sm:$0xff]  ;;  %v224_v23 = vld [vmem:[%s840_s5 + $0x38] sm:$0xff] }
   0x7   :  { %490 = vmatprep.mubr.msk.f32.mxu0 %vm124_vm1, %v32_v10  ;;  %v583_v21 = vpack.c.bf16 %v222_v19, %v221_v18  ;;  %v587_v24 = vpack.c.bf16 %v224_v23, %v223_v22  ;;  %v225_v25 = vld [vmem:[%s840_s5 + $0x40] sm:$0xff]  ;;  %v226_v26 = vld [vmem:[%s840_s5 + $0x48] sm:$0xff]  ;;  %v227_v28 = vld [vmem:[%s840_s5 + $0x50] sm:$0xff] }
   0x8   :  { %576 = vmatprep.subr.bf16.mxu1 %v575_v13  ;;  %v591_v27 = vpack.c.bf16 %v226_v26, %v225_v25  ;;  %v228_v29 = vld [vmem:[%s840_s5 + $0x58] sm:$0xff]  ;;  %v229_v31 = vld [vmem:[%s840_s5 + $0x60] sm:$0xff]  ;;  %v230_v32 = vld [vmem:[%s840_s5 + $0x68] sm:$0xff] }
   0x9   :  { %574 = vmatpush3.bf16.msra.mxu0 %v571_v8  ;;  %480 = vmatmul.mubr.msk.f32.vlgmr.msra.gmra.mrb[0].mxu1 %vm42_vm0, %v39_v16  ;;  %v595_v30 = vpack.c.bf16 %v228_v29, %v227_v28  ;;  %v599_v33 = vpack.c.bf16 %v230_v32, %v229_v31  ;;  %v231_v34 = vld [vmem:[%s840_s5 + $0x70] sm:$0xff]  ;;  %v232_v35 = vld [vmem:[%s840_s5 + $0x78] sm:$0xff]  ;;  %v317_v37 = vld [vmem:[%s841_s7] sm:$0xff] }
   0xa   :  { %578 = vmatpush3.bf16.msra.mxu1 %v575_v13  ;;  %v603_v36 = vpack.c.bf16 %v232_v35, %v231_v34  ;;  %v318_v38 = vld [vmem:[%s841_s7 + $0x8] sm:$0xff]  ;;  %v319_v39 = vld [vmem:[%s841_s7 + $0x10] sm:$0xff]  ;;  %v320_v41 = vld [vmem:[%s841_s7 + $0x18] sm:$0xff] }
   0xb   :  { %580 = vmatprep.subr.bf16.mxu1 %v579_v17  ;;  %v607_v40 = vpack.c.bf16 %v318_v38, %v317_v37  ;;  %v611_v42 = vpack.c.bf16 %v320_v41, %v319_v39  ;;  %v321_v43 = vld [vmem:[%s841_s7 + $0x20] sm:$0xff]  ;;  %v322_v44 = vld [vmem:[%s841_s7 + $0x28] sm:$0xff]  ;;  %v323_v46 = vld [vmem:[%s841_s7 + $0x30] sm:$0xff] }
   0xc   :  { %491 = vmatmul.mubr.msk.f32.vlgmr.msra.gmra.mrb[0].mxu0 %vm124_vm1, %v33_v20  ;;  %v615_v45 = vpack.c.bf16 %v322_v44, %v321_v43  ;;  %v324_v47 = vld [vmem:[%s841_s7 + $0x38] sm:$0xff]  ;;  %v325_v49 = vld [vmem:[%s841_s7 + $0x40] sm:$0xff]  ;;  %v326_v50 = vld [vmem:[%s841_s7 + $0x48] sm:$0xff] }
   0xd   :  { %608 = vmatprep.subr.bf16.mxu0 %v607_v40  ;;  %v619_v48 = vpack.c.bf16 %v324_v47, %v323_v46  ;;  %v623_v51 = vpack.c.bf16 %v326_v50, %v325_v49  ;;  %v327_v52 = vld [vmem:[%s841_s7 + $0x50] sm:$0xff]  ;;  %v328_v53 = vld [vmem:[%s841_s7 + $0x58] sm:$0xff]  ;;  %v329_v55 = vld [vmem:[%s841_s7 + $0x60] sm:$0xff] }
   0xe   :  { %582 = vmatpush3.bf16.msra.mxu1 %v579_v17  ;;  %610 = vmatpush3.bf16.msra.mxu0 %v607_v40  ;;  %v627_v54 = vpack.c.bf16 %v328_v53, %v327_v52  ;;  %v330_v56 = vld [vmem:[%s841_s7 + $0x68] sm:$0xff]  ;;  %v426_v61 = vld [vmem:[%s842_s4] ss:$0 sm:$0xff]  ;;  %v331_v5 = vld [vmem:[%s841_s7 + $0x70] sm:$0xff] }
   0xf   :  { %584 = vmatprep.subr.bf16.mxu1 %v583_v21  ;;  %612 = vmatprep.subr.bf16.mxu0 %v611_v42  ;;  %v631_v57 = vpack.c.bf16 %v330_v56, %v329_v55  ;;  %v332_v6 = vld [vmem:[%s841_s7 + $0x78] sm:$0xff]  ;;  %v427_v8 = vld [vmem:[%s843_s6] ss:$0 sm:$0xff] }
  0x10   :  { %v635_v7 = vpack.c.bf16 %v332_v6, %v331_v5  ;;  %v428_v15 = vld [vmem:[%s844_s8] ss:$0 sm:$0xff] }
  0x12   :  { %586 = vmatpush3.bf16.msra.mxu1 %v583_v21  ;;  %614 = vmatpush3.bf16.msra.mxu0 %v611_v42 }
  0x13   :  { %588 = vmatprep.subr.bf16.mxu1 %v587_v24  ;;  %616 = vmatprep.subr.bf16.mxu0 %v615_v45 }
  0x16   :  { %590 = vmatpush3.bf16.msra.mxu1 %v587_v24  ;;  %618 = vmatpush3.bf16.msra.mxu0 %v615_v45 }
  0x17   :  { %592 = vmatprep.subr.bf16.mxu1 %v591_v27  ;;  %620 = vmatprep.subr.bf16.mxu0 %v619_v48 }
  0x1a   :  { %594 = vmatpush3.bf16.msra.mxu1 %v591_v27  ;;  %622 = vmatpush3.bf16.msra.mxu0 %v619_v48 }
  0x1b   :  { %596 = vmatprep.subr.bf16.mxu1 %v595_v30  ;;  %624 = vmatprep.subr.bf16.mxu0 %v623_v51 }
  0x1e   :  { %598 = vmatpush3.bf16.msra.mxu1 %v595_v30  ;;  %626 = vmatpush3.bf16.msra.mxu0 %v623_v51 }
  0x1f   :  { %600 = vmatprep.subr.bf16.mxu1 %v599_v33  ;;  %628 = vmatprep.subr.bf16.mxu0 %v627_v54 }
  0x22   :  { %602 = vmatpush3.bf16.msra.mxu1 %v599_v33  ;;  %630 = vmatpush3.bf16.msra.mxu0 %v627_v54 }
  0x23   :  { %604 = vmatprep.subr.bf16.mxu1 %v603_v36  ;;  %632 = vmatprep.subr.bf16.mxu0 %v631_v57 }
  0x26   :  { %606 = vmatpush3.bf16.msra.mxu1 %v603_v36  ;;  %634 = vmatpush3.bf16.msra.mxu0 %v631_v57 }
  0x27   :  { %636 = vmatprep.subr.bf16.mxu0 %v635_v7 }
  0x2a   :  { %638 = vmatpush3.bf16.msra.mxu0 %v635_v7 }
  0xdc   :  { %v481_v58 = vpop.f32.mrb[0].mxu1 }
  0xdd   :  { %v115_v59 = vpop.f32.mrb[1].mxu1 }
  0xdf   :  { %v492_v60 = vpop.f32.mrb[0].mxu0 }
  0xe0   :  { %v203_v62 = vadd.f32 %v492_v60, %v481_v58  ;;  %v197_v63 = vpop.f32.mrb[1].mxu0 }
  0xe1   :  { %v198_v0 = vadd.f32 %v197_v63, %v115_v59 }
  0xe2   :  { %v214_v1 = vadd.f32 %v426_v61, %v203_v62 }
  0xe3   :  { %v213_v2 = vadd.f32 %v426_v61, %v198_v0 }
  0xe4   :  { %v216_v4 = vmax.f32 %v214_v1, 0.0 }
  0xe5   :  { %v215_v3 = vmax.f32 %v213_v2, 0.0 }
  0xe7   :  { %525 = vmatprep.mubr.f32.mxu1 %v215_v3 }
  0xe8   :  { %526 = vmatmul.mubr.f32.vlgmr.msra.gmra.mrb[2].mxu1 %v216_v4 }
 0x1bb   :  { %v527_v9 = vpop.f32.mrb[2].mxu1 }
 0x1bc   :  { %v312_v10 = vadd.f32 %v527_v9, %v427_v8  ;;  %v306_v11 = vpop.f32.mrb[3].mxu1 }
 0x1bd   :  { %v307_v12 = vadd.f32 %v427_v8, %v306_v11 }
 0x1be   :  { %v316_v14 = vmax.f32 %v312_v10, 0.0 }
 0x1bf   :  { %v315_v13 = vmax.f32 %v307_v12, 0.0 }
 0x1c1   :  { %560 = vmatprep.mubr.f32.mxu0 %v315_v13 }
 0x1c2   :  { %561 = vmatmul.mubr.f32.vlgmr.msra.gmra.mrb[2].mxu0 %v316_v14 }
 0x295   :  { %v562_v16 = vpop.f32.mrb[2].mxu0 }
 0x296   :  { %v412_v17 = vadd.f32 %v562_v16, %v428_v15  ;;  %v406_v18 = vpop.f32.mrb[3].mxu0 }
 0x297   :  { %v407_v19 = vadd.f32 %v428_v15, %v406_v18 }
 0x298   :  { %417 = vst.msk [vmem:[%s845_s9 + $0x8] sm:$0xff] %vm415_vm2, %v412_v17 }
 0x299   :  { %416 = vst.msk [vmem:[%s845_s9] sm:$0xff] %vm415_vm2, %v407_v19 }

</bundles_post_ra>
